<compile_context>
chip_gen: v7x
topology: tpu7x:2x2x1
jax: 0.10.0
libtpu: 0.0.40
codegen_flags: <defaults>
</compile_context>

<pallas_src>
import jax
import jax.numpy as jnp
from jax.experimental import pallas as pl
from jax.experimental.pallas import tpu as pltpu


def _outconv_kernel(w_ref, b_ref, x_ref, o_ref):
    """y[c] = sum_k w[c, k] * x[k] + b[c] on dense (S, 128) slabs.

    w_ref: SMEM (C_out * C_in,) f32, row-major over (C_out, C_in)
    b_ref: SMEM (C_out,) f32
    x_ref: VMEM (C_in, S, 128)
    o_ref: VMEM (C_out, S, 128)
    """
    cin = x_ref.shape[0]
    cout = o_ref.shape[0]

    x = x_ref[...].astype(jnp.float32)            # load the whole block once
    w = [w_ref[i] for i in range(cout * cin)]     # hoist scalar reads
    b = [b_ref[c] for c in range(cout)]

    outs = []
    for c in range(cout):                         # static unroll: C_out tiny
        acc = x[0] * w[c * cin]
        for k in range(1, cin):                   # static unroll: C_in tiny
            acc = acc + x[k] * w[c * cin + k]
        outs.append(acc + b[c])

    # Single whole-block store (one unmasked vst stream instead of C_out
    # separate 1-sublane masked stores).
    o_ref[...] = jnp.stack(outs, axis=0).astype(o_ref.dtype)


def out_conv(x, weight, bias, *, tile_pixels=262144, force_pallas=False):
    """1x1 Conv2d forward (PyTorch OutConv).

    x:      (N, C_in, H, W)
    weight: (C_out, C_in, 1, 1)
    bias:   (C_out,)
    returns (N, C_out, H, W)
    """
    n, cin, h, w = x.shape
    cout = weight.shape[0]
    rows = h * w
    itemsize = jnp.dtype(x.dtype).itemsize

    w2d = weight.reshape(cout, cin).astype(jnp.float32)
    b1d = bias.reshape(cout).astype(jnp.float32)

    # Tiny inputs: launch + per-step overhead dwarfs the HBM traffic; let
    # XLA's fused elementwise path handle them.
    if (n * cin * rows * itemsize) < (256 << 10) and not force_pallas:
        y = jnp.einsum("nchw,oc->nohw", x.astype(jnp.float32), w2d)
        y = y + b1d.reshape(1, cout, 1, 1)
        return y.astype(x.dtype)

    # Repack pixels into dense (groups, 128) slabs.  Pad rows to a multiple
    # of 128 once (zero-copy reshape when already aligned).
    rows_padded = ((rows + 127) // 128) * 128
    n_groups = rows_padded // 128
    x3d = x.reshape(n, cin, rows)
    if rows_padded != rows:
        x3d = jnp.pad(x3d, ((0, 0), (0, 0), (0, rows_padded - rows)))
    x4d = x3d.reshape(n, cin, n_groups, 128)

    # Sublane-group tile S: multiple of 8 (or the full extent).  Default
    # 262144 pixels/step => S = 2048; ~14 MiB double-buffered f32 working set
    # fits comfortably under v7x's 64 MiB VMEM and v5e/v6e limits.
    target_groups = max(8, (tile_pixels // 128 // 8) * 8)
    if n_groups <= target_groups:
        s = n_groups
    else:
        s = target_groups
    # Megacore balance: prefer >= 4 grid steps total when the tile allows it.
    while n * pl.cdiv(n_groups, s) < 4 and s % 16 == 0 and s > 8:
        s //= 2

    grid = (n, pl.cdiv(n_groups, s))

    # Explicit VMEM budget: 2x double-buffered (in + out) blocks + headroom.
    block_in_bytes = cin * s * 128 * itemsize
    block_out_bytes = cout * s * 128 * itemsize
    vmem_limit = int(3 * (block_in_bytes + block_out_bytes)) + (2 << 20)

    w_flat = w2d.reshape(cout * cin)

    y4d = pl.pallas_call(
        _outconv_kernel,
        out_shape=jax.ShapeDtypeStruct((n, cout, n_groups, 128), x.dtype),
        grid_spec=pltpu.PrefetchScalarGridSpec(
            num_scalar_prefetch=0,
            grid=grid,
            in_specs=[
                pl.BlockSpec(memory_space=pltpu.MemorySpace.SMEM),   # weights
                pl.BlockSpec(memory_space=pltpu.MemorySpace.SMEM),   # bias
                pl.BlockSpec((None, cin, s, 128),
                             lambda b, j: (b, 0, j, 0)),             # x slab
            ],
            out_specs=pl.BlockSpec((None, cout, s, 128),
                                   lambda b, j: (b, 0, j, 0)),
        ),
        compiler_params=pltpu.CompilerParams(
            dimension_semantics=("parallel", "parallel"),
            vmem_limit_bytes=vmem_limit,
        ),
    )(w_flat, b1d, x4d)

    y3d = y4d.reshape(n, cout, rows_padded)
    if rows_padded != rows:
        y3d = y3d[:, :, :rows]
    return y3d.reshape(n, cout, h, w)


def _ref_out_conv(x, weight, bias):
    cout, cin = weight.shape[0], weight.shape[1]
    return (jnp.einsum("nchw,oc->nohw", x, weight.reshape(cout, cin))
            + bias.reshape(1, cout, 1, 1))


if __name__ == "__main__":
    # Shapes consistent with OutConv(in_channels=4, out_channels=3).
    N, C_IN, C_OUT, H, W = 2, 4, 3, 16, 16

    key = jax.random.PRNGKey(0)
    kx, kw, kb = jax.random.split(key, 3)

    x = jax.random.normal(kx, (N, C_IN, H, W), dtype=jnp.float32)
    weight = jax.random.normal(kw, (C_OUT, C_IN, 1, 1), dtype=jnp.float32) * 0.1
    bias = jax.random.normal(kb, (C_OUT,), dtype=jnp.float32) * 0.1

    # Force the Pallas path so the kernel itself is exercised on this small
    # test shape (production dispatch would use the einsum fallback here).
    y = out_conv(x, weight, bias, force_pallas=True)
    jax.block_until_ready(y)

    y_ref = _ref_out_conv(x, weight, bias)
    assert y.shape == (N, C_OUT, H, W)
    assert jnp.allclose(y, y_ref, atol=1e-5, rtol=1e-5)

    # Ragged-rows case (H*W not a multiple of 128) exercises the pad path.
    x2 = jax.random.normal(kx, (N, C_IN, 10, 9), dtype=jnp.float32)
    y2 = out_conv(x2, weight, bias, force_pallas=True)
    jax.block_until_ready(y2)
    assert jnp.allclose(y2, _ref_out_conv(x2, weight, bias), atol=1e-5, rtol=1e-5)

    print("KERNEL_OK")
</pallas_src>

<mosaic_0001>
module attributes {stable_mosaic.version = 11 : i64} {
  func.func @_outconv_kernel(%arg0: i32, %arg1: i32, %arg2: memref<12xf32, #tpu.memory_space<smem>>, %arg3: memref<3xf32, #tpu.memory_space<smem>>, %arg4: memref<1x4x2x128xf32, #tpu.memory_space<vmem>>, %arg5: memref<1x3x2x128xf32, #tpu.memory_space<vmem>>) attributes {dimension_semantics = [#tpu.dimension_semantics<parallel>, #tpu.dimension_semantics<parallel>], iteration_bounds = array<i64: 2, 1>, scalar_prefetch = 0 : i64, scratch_operands = 0 : i64, tpu.core_type = #tpu.core_type<tc>, window_params = [{transform_indices = @transform_0, window_bounds = array<i64: 12>}, {transform_indices = @transform_1, window_bounds = array<i64: 3>}, {transform_indices = @transform_2, window_bounds = array<i64: 1, 4, 2, 128>}, {transform_indices = @transform_3, window_bounds = array<i64: 1, 3, 2, 128>}]} {
    %c0 = arith.constant 0 : index
    %c0_0 = arith.constant 0 : index
    %c0_1 = arith.constant 0 : index
    %c0_2 = arith.constant 0 : index
    %0 = vector.load %arg4[%c0, %c0_0, %c0_1, %c0_2] : memref<1x4x2x128xf32, #tpu.memory_space<vmem>>, vector<1x4x2x128xf32>
    %1 = vector.shape_cast %0 : vector<1x4x2x128xf32> to vector<4x2x128xf32>
    %c0_3 = arith.constant 0 : index
    %2 = memref.load %arg2[%c0_3] : memref<12xf32, #tpu.memory_space<smem>>
    %c1 = arith.constant 1 : index
    %3 = memref.load %arg2[%c1] : memref<12xf32, #tpu.memory_space<smem>>
    %c2 = arith.constant 2 : index
    %4 = memref.load %arg2[%c2] : memref<12xf32, #tpu.memory_space<smem>>
    %c3 = arith.constant 3 : index
    %5 = memref.load %arg2[%c3] : memref<12xf32, #tpu.memory_space<smem>>
    %c4 = arith.constant 4 : index
    %6 = memref.load %arg2[%c4] : memref<12xf32, #tpu.memory_space<smem>>
    %c5 = arith.constant 5 : index
    %7 = memref.load %arg2[%c5] : memref<12xf32, #tpu.memory_space<smem>>
    %c6 = arith.constant 6 : index
    %8 = memref.load %arg2[%c6] : memref<12xf32, #tpu.memory_space<smem>>
    %c7 = arith.constant 7 : index
    %9 = memref.load %arg2[%c7] : memref<12xf32, #tpu.memory_space<smem>>
    %c8 = arith.constant 8 : index
    %10 = memref.load %arg2[%c8] : memref<12xf32, #tpu.memory_space<smem>>
    %c9 = arith.constant 9 : index
    %11 = memref.load %arg2[%c9] : memref<12xf32, #tpu.memory_space<smem>>
    %c10 = arith.constant 10 : index
    %12 = memref.load %arg2[%c10] : memref<12xf32, #tpu.memory_space<smem>>
    %c11 = arith.constant 11 : index
    %13 = memref.load %arg2[%c11] : memref<12xf32, #tpu.memory_space<smem>>
    %c0_4 = arith.constant 0 : index
    %14 = memref.load %arg3[%c0_4] : memref<3xf32, #tpu.memory_space<smem>>
    %c1_5 = arith.constant 1 : index
    %15 = memref.load %arg3[%c1_5] : memref<3xf32, #tpu.memory_space<smem>>
    %c2_6 = arith.constant 2 : index
    %16 = memref.load %arg3[%c2_6] : memref<3xf32, #tpu.memory_space<smem>>
    %17 = vector.extract_strided_slice %1 {offsets = [0, 0, 0], sizes = [1, 2, 128], strides = [1, 1, 1]} : vector<4x2x128xf32> to vector<1x2x128xf32>
    %18 = vector.shape_cast %17 : vector<1x2x128xf32> to vector<2x128xf32>
    %19 = vector.broadcast %2 : f32 to vector<2x128xf32>
    %20 = arith.mulf %18, %19 : vector<2x128xf32>
    %21 = vector.extract_strided_slice %1 {offsets = [1, 0, 0], sizes = [1, 2, 128], strides = [1, 1, 1]} : vector<4x2x128xf32> to vector<1x2x128xf32>
    %22 = vector.shape_cast %21 : vector<1x2x128xf32> to vector<2x128xf32>
    %23 = vector.broadcast %3 : f32 to vector<2x128xf32>
    %24 = arith.mulf %22, %23 : vector<2x128xf32>
    %25 = arith.addf %20, %24 : vector<2x128xf32>
    %26 = vector.extract_strided_slice %1 {offsets = [2, 0, 0], sizes = [1, 2, 128], strides = [1, 1, 1]} : vector<4x2x128xf32> to vector<1x2x128xf32>
    %27 = vector.shape_cast %26 : vector<1x2x128xf32> to vector<2x128xf32>
    %28 = vector.broadcast %4 : f32 to vector<2x128xf32>
    %29 = arith.mulf %27, %28 : vector<2x128xf32>
    %30 = arith.addf %25, %29 : vector<2x128xf32>
    %31 = vector.extract_strided_slice %1 {offsets = [3, 0, 0], sizes = [1, 2, 128], strides = [1, 1, 1]} : vector<4x2x128xf32> to vector<1x2x128xf32>
    %32 = vector.shape_cast %31 : vector<1x2x128xf32> to vector<2x128xf32>
    %33 = vector.broadcast %5 : f32 to vector<2x128xf32>
    %34 = arith.mulf %32, %33 : vector<2x128xf32>
    %35 = arith.addf %30, %34 : vector<2x128xf32>
    %36 = vector.broadcast %14 : f32 to vector<2x128xf32>
    %37 = arith.addf %35, %36 : vector<2x128xf32>
    %38 = vector.extract_strided_slice %1 {offsets = [0, 0, 0], sizes = [1, 2, 128], strides = [1, 1, 1]} : vector<4x2x128xf32> to vector<1x2x128xf32>
    %39 = vector.shape_cast %38 : vector<1x2x128xf32> to vector<2x128xf32>
    %40 = vector.broadcast %6 : f32 to vector<2x128xf32>
    %41 = arith.mulf %39, %40 : vector<2x128xf32>
    %42 = vector.extract_strided_slice %1 {offsets = [1, 0, 0], sizes = [1, 2, 128], strides = [1, 1, 1]} : vector<4x2x128xf32> to vector<1x2x128xf32>
    %43 = vector.shape_cast %42 : vector<1x2x128xf32> to vector<2x128xf32>
    %44 = vector.broadcast %7 : f32 to vector<2x128xf32>
    %45 = arith.mulf %43, %44 : vector<2x128xf32>
    %46 = arith.addf %41, %45 : vector<2x128xf32>
    %47 = vector.extract_strided_slice %1 {offsets = [2, 0, 0], sizes = [1, 2, 128], strides = [1, 1, 1]} : vector<4x2x128xf32> to vector<1x2x128xf32>
    %48 = vector.shape_cast %47 : vector<1x2x128xf32> to vector<2x128xf32>
    %49 = vector.broadcast %8 : f32 to vector<2x128xf32>
    %50 = arith.mulf %48, %49 : vector<2x128xf32>
    %51 = arith.addf %46, %50 : vector<2x128xf32>
    %52 = vector.extract_strided_slice %1 {offsets = [3, 0, 0], sizes = [1, 2, 128], strides = [1, 1, 1]} : vector<4x2x128xf32> to vector<1x2x128xf32>
    %53 = vector.shape_cast %52 : vector<1x2x128xf32> to vector<2x128xf32>
    %54 = vector.broadcast %9 : f32 to vector<2x128xf32>
    %55 = arith.mulf %53, %54 : vector<2x128xf32>
    %56 = arith.addf %51, %55 : vector<2x128xf32>
    %57 = vector.broadcast %15 : f32 to vector<2x128xf32>
    %58 = arith.addf %56, %57 : vector<2x128xf32>
    %59 = vector.extract_strided_slice %1 {offsets = [0, 0, 0], sizes = [1, 2, 128], strides = [1, 1, 1]} : vector<4x2x128xf32> to vector<1x2x128xf32>
    %60 = vector.shape_cast %59 : vector<1x2x128xf32> to vector<2x128xf32>
    %61 = vector.broadcast %10 : f32 to vector<2x128xf32>
    %62 = arith.mulf %60, %61 : vector<2x128xf32>
    %63 = vector.extract_strided_slice %1 {offsets = [1, 0, 0], sizes = [1, 2, 128], strides = [1, 1, 1]} : vector<4x2x128xf32> to vector<1x2x128xf32>
    %64 = vector.shape_cast %63 : vector<1x2x128xf32> to vector<2x128xf32>
    %65 = vector.broadcast %11 : f32 to vector<2x128xf32>
    %66 = arith.mulf %64, %65 : vector<2x128xf32>
    %67 = arith.addf %62, %66 : vector<2x128xf32>
    %68 = vector.extract_strided_slice %1 {offsets = [2, 0, 0], sizes = [1, 2, 128], strides = [1, 1, 1]} : vector<4x2x128xf32> to vector<1x2x128xf32>
    %69 = vector.shape_cast %68 : vector<1x2x128xf32> to vector<2x128xf32>
    %70 = vector.broadcast %12 : f32 to vector<2x128xf32>
    %71 = arith.mulf %69, %70 : vector<2x128xf32>
    %72 = arith.addf %67, %71 : vector<2x128xf32>
    %73 = vector.extract_strided_slice %1 {offsets = [3, 0, 0], sizes = [1, 2, 128], strides = [1, 1, 1]} : vector<4x2x128xf32> to vector<1x2x128xf32>
    %74 = vector.shape_cast %73 : vector<1x2x128xf32> to vector<2x128xf32>
    %75 = vector.broadcast %13 : f32 to vector<2x128xf32>
    %76 = arith.mulf %74, %75 : vector<2x128xf32>
    %77 = arith.addf %72, %76 : vector<2x128xf32>
    %78 = vector.broadcast %16 : f32 to vector<2x128xf32>
    %79 = arith.addf %77, %78 : vector<2x128xf32>
    %80 = vector.shape_cast %37 : vector<2x128xf32> to vector<1x2x128xf32>
    %81 = vector.shape_cast %58 : vector<2x128xf32> to vector<1x2x128xf32>
    %82 = vector.shape_cast %79 : vector<2x128xf32> to vector<1x2x128xf32>
    %83 = tpu.concatenate %80, %81, %82 in 0 : vector<1x2x128xf32>, vector<1x2x128xf32>, vector<1x2x128xf32> -> vector<3x2x128xf32>
    %c0_7 = arith.constant 0 : index
    %c0_8 = arith.constant 0 : index
    %c0_9 = arith.constant 0 : index
    %c0_10 = arith.constant 0 : index
    %84 = vector.load %arg5[%c0_7, %c0_8, %c0_9, %c0_10] : memref<1x3x2x128xf32, #tpu.memory_space<vmem>>, vector<1x3x2x128xf32>
    %85 = vector.shape_cast %84 : vector<1x3x2x128xf32> to vector<3x2x128xf32>
    %86 = vector.shape_cast %83 : vector<3x2x128xf32> to vector<1x3x2x128xf32>
    tpu.vector_store %arg5[%c0_7, %c0_8, %c0_9, %c0_10], %86 {strides = array<i32>} : memref<1x3x2x128xf32, #tpu.memory_space<vmem>>, vector<1x3x2x128xf32>,
    return
  }
  func.func @transform_0(%arg0: i32, %arg1: i32) -> i32 {
    %c0_i32 = arith.constant 0 : i32
    %c0_i32_0 = arith.constant 0 : i32
    return %c0_i32 : i32
  }
  func.func @transform_1(%arg0: i32, %arg1: i32) -> i32 {
    %c0_i32 = arith.constant 0 : i32
    %c0_i32_0 = arith.constant 0 : i32
    return %c0_i32 : i32
  }
  func.func @transform_2(%arg0: i32, %arg1: i32) -> (i32, i32, i32, i32) {
    %c0_i32 = arith.constant 0 : i32
    %c0_i32_0 = arith.constant 0 : i32
    %c0_i32_1 = arith.constant 0 : i32
    return %arg0, %c0_i32, %arg1, %c0_i32_0 : i32, i32, i32, i32
  }
  func.func @transform_3(%arg0: i32, %arg1: i32) -> (i32, i32, i32, i32) {
    %c0_i32 = arith.constant 0 : i32
    %c0_i32_0 = arith.constant 0 : i32
    %c0_i32_1 = arith.constant 0 : i32
    return %arg0, %c0_i32, %arg1, %c0_i32_0 : i32, i32, i32, i32
  }
}

</mosaic_0001>

<bundles_post_ra>
// kernel: tpu_custom_call.1
= control target key start
LH: loop header
LB: loop body
LE: loop exit
PB: predicated region body
PF: predicated region fallthrough
CT: control target
= control target key end

     0   :  { %8 = vsyncpa [#allocation5], 0  ;;  %s948_s0 = inlined_call_operand.hbm [shape: f32[12], index: 0, kind: input, shape index: {}]   ;;  %s949_s1 = inlined_call_operand.vmem [shape: f32[3], index: 1, kind: input, shape index: {}]   ;;  %s950_s2 = inlined_call_operand.hbm [shape: f32[2,4,2,128], index: 2, kind: input, shape index: {}]   ;;  %s951_s3 = inlined_call_operand.hbm [shape: f32[2,3,2,128], index: 3, kind: output, shape index: {}]  }
   0x1   :  { %9 = vsyncpa [#allocation6], 0 }
   0x2   :  { %10 = vsyncpa [#allocation3], 0 }
   0x3   :  { %12 = vsyncpa [#allocation3 + $0x1], 0 }
   0x4   :  { %13 = vsyncpa [#allocation4], 0 }
   0x5   :  { %15 = vsyncpa [#allocation4 + $0x1], 0  ;;  %s713_s12 = smov 0   ;;  %s715_s13 = smov 0  }
   0x6   :  { %s717_s14 = smov 0   ;;  %s719_s15 = smov 0  }
   0x7   :  { %s721_s16 = smov 0   ;;  %s723_s17 = smov 0  }
   0x8 LB: > { %s416_s18 = sadd.s32 4294967295, %s683_s17   ;;  %s417_s19 = sadd.s32 4294967294, %s683_s17   ;;  %s683_s17 = sphi %s723_s17, %s21_s17   ;;  %s679_s16 = sphi %s721_s16, %s972_s16   ;;  %s675_s15 = sphi %s719_s15, %s971_s15   ;;  %s671_s14 = sphi %s717_s14, %s970_s14   ;;  %s667_s13 = sphi %s715_s13, %s969_s13   ;;  %s663_s12 = sphi %s713_s12, %s968_s12  }
   0x9   : > { %s84_s20 = sadd.s32 1, %s671_s14  ;;  %p91_p0 = scmp.ne.s32.totalorder %s671_s14, %s667_s13 }
   0xa   : > { %p92_p1 = scmp.eq.s32.totalorder %s683_s17, 0  ;;  %p97_p2 = scmp.ne.s32.totalorder %s667_s13, %s663_s12 }
   0xb   : > { %p751_p3 = scmp.eq.s32.totalorder %s416_s18, 0  ;;  %p123_p4 = scmp.eq.s32.totalorder %s416_s18, 1 }
   0xc   : > { %p93_p5 = por %p92_p1, %p91_p0  ;;  %p129_p6 = scmp.eq.s32.totalorder %s417_s19, 1 }
   0xd   : > { %s956_s21 = scalar_select %p751_p3, 1, 0 }
   0xe   : > { %p757_p7 = por %p751_p3, %p97_p2  ;;  %p761_p8 = por %p123_p4, %p91_p0 }
   0xf   : > { %p765_p9 = por %p129_p6, %p97_p2  ;;  %p418_p10 = scmp.ge.s32.totalorder %s683_s17, 1 }
  0x10   : > { %s957_s22 = scalar_select %p757_p7, 1, 0 }
  0x11   : > { %s958_s23 = scalar_select %p761_p8, 1, 0 }
  0x12   : > { %s959_s24 = scalar_select %p765_p9, 1, 0 }
  0x13   : > { %p136_p11 = scmp.lt.s32.totalorder %s683_s17, 3  ;;  %p477_p1 = scmp.lt.s32.totalorder %s683_s17, 2 }
  0x14   : > { %s158_s28 = sshll.u32 %s949_s1, 4  ;;  %s169_s4 = sand.u32 1, %s671_s14   ;;  %s159_s28 = int_to_ptr.vmem [resolvable:$true] %s158_s28 }
  0x15   : > { %p772_p13 = pnand %p418_p10, %p136_p11  ;;  %p782_p4 = pnand %p477_p1, %p93_p5 }
  0x16   : > { %s33_s5 = sadd.s32 1, %s679_s16  ;;  %s535_s8 = scalar_lea.hbm %s948_s0, 16 }
  0x17   : > { %p460_p0 = pneg %p772_p13  ;;  %p536_p5 = scmp.ne.s32.totalorder %s948_s0, %s535_s8 }
  0x18   : > { %p542_p1 = scmp.lt.u32.totalorder %s535_s8, %s948_s0 }
  0x19   : > { %p788_p2 = pnand %p460_p0, %p751_p3 }
  0x1b   : > { %p537_p6 = pneg %p788_p2 }
  0x1d   : > { %p538_p10 = pnand %p537_p6, %p536_p5 }
  0x1f   : > { %p539_p11 = pneg %p538_p10 }
  0x21   : > { %p544_p0 = pnand %p542_p1, %p539_p11 }
  0x23   : > { %547 = shalt.err (!%p544_p0)
}
  0x24   : > { %s685_s19 = smov [#allocation2]   ;;  %s548_s6 = scalar_lea.vmem %s159_s28, 16 }
  0x25   : > { %463 = dma.hbm_to_smem (!%p788_p2), %s948_s0, 16, %s685_s19, [#allocation5]  }
  0x26   : > { %p549_p12 = scmp.ne.s32.totalorder %s159_s28, %s548_s6  ;;  %p556_p7 = scmp.lt.s32.totalorder %s159_s28, %s159_s28 }
  0x27   : > { %p557_p5 = scmp.lt.s32.totalorder %s548_s6, %s548_s6 }
  0x28   : > { %p551_p9 = pnand %p549_p12, %p537_p6 }
  0x29   : > { %p558_p10 = por %p557_p5, %p556_p7 }
  0x2a   : > { %p552_p8 = pneg %p551_p9 }
  0x2c   : > { %p559_p3 = pnand %p558_p10, %p552_p8 }
  0x2e   : > { %562 = shalt.err (!%p559_p3)
}
  0x2f   : > { %s686_s7 = smov [#allocation7]   ;;  %p35_p11 = scmp.ge.s32.totalorder %s33_s5, 2 }
  0x30   : > { %466 = dma.vmem_to_smem (!%p788_p2), %s159_s28, 16, %s686_s7, [#allocation6]  }
  0x31   : > { %s422_s8 = sshll.u32 %s169_s4, 3  ;;  %s445_s9 = sshll.u32 %s679_s16, 7 }
  0x32   : > { %s974_s5 = smov (%p35_p11, %s33_s5), 0  ;;  %s820_s30 = scalar_lea.hbm %s950_s2, %s445_s9 }
  0x33   : > { %s79_s18 = ssub.s32 %s679_s16, %s974_s5  ;;  %s173_s19 = scalar_lea.vmem [#allocation8], %s422_s8 }
  0x34   : > { %s181_s28 = sshll.u32 %s173_s19, 4  ;;  %p82_p3 = scmp.eq.s32.totalorder %s79_s18, 0  ;;  %s824_s28 = int_to_ptr.vmem [resolvable:$true] %s181_s28 }
  0x35   : > { %s833_s27 = scalar_lea.sflag [#allocation3], %s169_s4  ;;  %s563_s6 = scalar_lea.hbm %s820_s30, 128 }
  0x36   : > { %s829_s26 = scalar_select %p82_p3, %s671_s14, %s84_s20  }
  0x37   : > { %p564_p7 = scmp.ne.s32.totalorder %s820_s30, %s563_s6  ;;  %p565_p8 = pneg %p782_p4 }
  0x38   : > { %s568_s9 = scalar_lea.hbm %s950_s2, 256  ;;  %p569_p2 = scmp.lt.u32.totalorder %s820_s30, %s950_s2 }
  0x39   : > { %p566_p9 = pnand %p565_p8, %p564_p7  ;;  %p570_p6 = scmp.lt.u32.totalorder %s568_s9, %s563_s6 }
  0x3a   : > { %p572_p0 = scmp.lt.u32.totalorder %s563_s6, %s820_s30 }
  0x3b   : > { %p567_p12 = pneg %p566_p9  ;;  %p571_p1 = por %p570_p6, %p569_p2 }
  0x3d   : > { %p573_p5 = por %p572_p0, %p571_p1 }
  0x3f   : > { %p574_p10 = pnand %p573_p5, %p567_p12 }
  0x41   : > { %577 = shalt.err (!%p574_p10)
}
  0x42   : > { %s578_s20 = scalar_lea.vmem %s824_s28, 128  ;;  %s687_s4 = smov [#allocation8]  }
  0x43   : > { %p579_p11 = scmp.ne.s32.totalorder %s824_s28, %s578_s20  ;;  %s583_s18 = sshll.u32 %s687_s4, 4  ;;  %s584_s18 = int_to_ptr.vmem [resolvable:$false] %s583_s18 }
  0x44   : > { %s585_s19 = scalar_lea.vmem %s584_s18, 256  ;;  %p586_p9 = scmp.lt.s32.totalorder %s824_s28, %s584_s18 }
  0x45   : > { %p581_p3 = pnand %p579_p11, %p565_p8  ;;  %p587_p2 = scmp.lt.s32.totalorder %s585_s19, %s578_s20 }
  0x47   : > { %p582_p7 = pneg %p581_p3  ;;  %p588_p6 = por %p587_p2, %p586_p9 }
  0x49   : > { %p589_p1 = pnand %p588_p6, %p582_p7 }
  0x4b   : > { %592 = shalt.err (!%p589_p1)
}
  0x4c   : > { %s688_s6 = smov 32   ;;  %s689_s7 = smov 2  }
  0x4d   : > { %470 = dma.hbm_to_vmem [thread:$0]  (!%p782_p4), %s820_s30, 128, %s824_s28, %s833_s27, %s688_s6, %s688_s6, %s689_s7  }
  0x4e   : > { %193 = sbr.rel (%p772_p13) target bundleno = 131 (0x83), region = 32  ;;  %p963_p8 = scmp.ne.s32.totalorder (!%p772_p13), %s956_s21, 0 }
  0x55   : > { %646 = dma.done.wait (%p963_p8), [#allocation5], 16  }
  0x56   : > { %648 = vsyncadd (%p963_p8), [#allocation5], 4294967280 }
  0x57   : > { %650 = dma.done.wait (%p963_p8), [#allocation6], 16  }
  0x58   : > { %652 = vsyncadd (%p963_p8), [#allocation6], 4294967280  ;;  %s872_s8 = sand.u32 1, %s667_s13   ;;  %p964_p13 = scmp.ne.s32.totalorder %s957_s22, 0 }
  0x59   : > { %s428_s25 = sshll.u32 %s872_s8, 3  ;;  %s204_s29 = scalar_lea.sflag [#allocation3], %s872_s8 }
  0x5a   : > { %s207_s30 = scalar_lea.vmem [#allocation8], %s428_s25 }
  0x5b   : > { %654 = dma.done.wait (%p964_p13), %s204_s29, 128  }
  0x5c   : > { %656 = vsyncadd (%p964_p13), %s204_s29, 4294967168 }
  0x5d   : > { %212 = sfence }
  0x5e   : > { %s235_s28 = sld [smem:[#allocation2]]  ;;  %s429_s27 = sld [smem:[#allocation2 + $0x1]]  ;;  %v231_v0 = vld [vmem:[%s207_s30] sm:$0x3]  ;;  %v232_v1 = vld [vmem:[%s207_s30 + $0x2] sm:$0x3] }
  0x5f   : > { %s430_s9 = sld [smem:[#allocation2 + $0x2]]  ;;  %s431_s21 = sld [smem:[#allocation2 + $0x3]]  ;;  %v233_v2 = vld [vmem:[%s207_s30 + $0x4] sm:$0x3]  ;;  %v234_v4 = vld [vmem:[%s207_s30 + $0x6] sm:$0x3] }
  0x60   : > { %s880_s10 = sld [smem:[#allocation7]]  ;;  %s432_s11 = sld [smem:[#allocation2 + $0x4]] }
  0x61   : > { %s433_s20 = sld [smem:[#allocation2 + $0x5]]  ;;  %s434_s4 = sld [smem:[#allocation2 + $0x6]] }
  0x62   : > { %s435_s18 = sld [smem:[#allocation2 + $0x7]]  ;;  %s436_s22 = sld [smem:[#allocation2 + $0x8]] }
  0x63   : > { %s437_s19 = sld [smem:[#allocation2 + $0x9]]  ;;  %s438_s6 = sld [smem:[#allocation2 + $0xa]] }
  0x64   : > { %v250_v3 = vstv %s235_s28  ;;  %v252_v6 = vstv %s429_s27  ;;  %s882_s7 = sld [smem:[#allocation2 + $0xb]]  ;;  %s884_s25 = sld [smem:[#allocation7 + $0x1]] }
  0x65   : > { %v251_v5 = vmul.f32 %v250_v3, %v231_v0  ;;  %v253_v7 = vmul.f32 %v252_v6, %v232_v1  ;;  %v255_v8 = vstv %s430_s9  ;;  %v258_v9 = vstv %s431_s21  ;;  %s446_s29 = smul.u32 6, %s872_s8  ;;  %s887_s30 = sld [smem:[#allocation7 + $0x2]] }
  0x66   : > { %v256_v10 = vmul.f32 %v255_v8, %v233_v2  ;;  %v259_v12 = vmul.f32 %v258_v9, %v234_v4  ;;  %v263_v13 = vstv %s432_s11  ;;  %v261_v21 = vstv %s880_s10  ;;  %s447_s9 = smul.u32 96, %s675_s15  ;;  %p965_p12 = scmp.ne.s32.totalorder %s958_s23, 0 }
  0x67   : > { %v254_v11 = vadd.f32 %v253_v7, %v251_v5  ;;  %v264_v14 = vmul.f32 %v263_v13, %v231_v0  ;;  %v265_v15 = vstv %s433_s20  ;;  %v268_v16 = vstv %s434_s4  ;;  %s230_s28 = scalar_lea.vmem [#allocation9], %s446_s29  ;;  %s293_s20 = scalar_lea.sflag [#allocation4], %s872_s8 }
  0x68   : > { %v266_v18 = vmul.f32 %v265_v15, %v232_v1  ;;  %v269_v19 = vmul.f32 %v268_v16, %v233_v2  ;;  %v271_v20 = vstv %s435_s18  ;;  %v276_v23 = vstv %s436_s22  ;;  %s307_s27 = sshll.u32 %s230_s28, 4  ;;  %s899_s11 = scalar_lea.hbm %s951_s3, %s447_s9  ;;  %s894_s27 = int_to_ptr.vmem [resolvable:$true] %s307_s27 }
  0x69   : > { %v257_v17 = vadd.f32 %v256_v10, %v254_v11  ;;  %v272_v22 = vmul.f32 %v271_v20, %v234_v4  ;;  %v278_v24 = vstv %s437_s19  ;;  %v277_v27 = vmul.f32 %v276_v23, %v231_v0  ;;  %s593_s4 = scalar_lea.vmem %s894_s27, 96  ;;  %s690_s15 = smov [#allocation9]  }
  0x6a   : > { %v267_v26 = vadd.f32 %v266_v18, %v264_v14  ;;  %v279_v28 = vmul.f32 %v278_v24, %v232_v1  ;;  %v281_v29 = vstv %s438_s6  ;;  %v284_v30 = vstv %s882_s7  ;;  %p594_p4 = scmp.ne.s32.totalorder %s894_s27, %s593_s4  ;;  %s597_s18 = sshll.u32 %s690_s15, 4  ;;  %s598_s18 = int_to_ptr.vmem [resolvable:$false] %s597_s18 }
  0x6b   : > { %v260_v25 = vadd.f32 %v259_v12, %v257_v17  ;;  %v282_v34 = vmul.f32 %v281_v29, %v233_v2  ;;  %v274_v35 = vstv %s884_s25  ;;  %v285_v36 = vmul.f32 %v284_v30, %v234_v4  ;;  %s599_s22 = scalar_lea.vmem %s598_s18, 192  ;;  %p600_p10 = scmp.lt.s32.totalorder %s894_s27, %s598_s18 }
  0x6c   : > { %v270_v32 = vadd.f32 %v269_v19, %v267_v26  ;;  %v280_v33 = vadd.f32 %v279_v28, %v277_v27  ;;  %v287_v39 = vstv %s887_s30  ;;  %p595_p0 = pnand %p594_p4, %p965_p12  ;;  %p601_p11 = scmp.lt.s32.totalorder %s599_s22, %s593_s4 }
  0x6d   : > { %v262_v31 = vadd.f32 %v261_v21, %v260_v25 }
  0x6e   : > { %v273_v37 = vadd.f32 %v272_v22, %v270_v32  ;;  %v283_v38 = vadd.f32 %v282_v34, %v280_v33  ;;  %p596_p5 = pneg %p595_p0  ;;  %p602_p3 = por %p601_p11, %p600_p10 }
  0x6f   : > { %289 = vst [vmem:[%s230_s28] sm:$0x3] %v262_v31 }
  0x70   : > { %v275_v40 = vadd.f32 %v274_v35, %v273_v37  ;;  %v286_v41 = vadd.f32 %v285_v36, %v283_v38  ;;  %p603_p7 = pnand %p602_p3, %p596_p5 }
  0x72   : > { %290 = vst [vmem:[%s230_s28 + $0x2] sm:$0x3] %v275_v40  ;;  %v288_v42 = vadd.f32 %v287_v39, %v286_v41 }
  0x74   : > { %291 = vst [vmem:[%s230_s28 + $0x4] sm:$0x3] %v288_v42 }
  0x75   : > { %606 = shalt.err (!%p603_p7)
}
  0x76   : > { %s607_s19 = scalar_lea.hbm %s899_s11, 96  ;;  %s611_s25 = scalar_lea.hbm %s951_s3, 192 }
  0x77   : > { %p608_p9 = scmp.ne.s32.totalorder %s899_s11, %s607_s19  ;;  %p612_p1 = scmp.lt.u32.totalorder %s899_s11, %s951_s3 }
  0x78   : > { %p613_p8 = scmp.lt.u32.totalorder %s611_s25, %s607_s19  ;;  %p615_p4 = scmp.lt.u32.totalorder %s607_s19, %s899_s11 }
  0x79   : > { %p609_p2 = pnand %p608_p9, %p965_p12 }
  0x7a   : > { %p614_p13 = por %p613_p8, %p612_p1 }
  0x7b   : > { %p610_p6 = pneg %p609_p2 }
  0x7c   : > { %p616_p0 = por %p615_p4, %p614_p13 }
  0x7e   : > { %p617_p5 = pnand %p616_p0, %p610_p6 }
  0x80   : > { %620 = shalt.err (!%p617_p5)
}
  0x81   : > { %s691_s28 = smov 32   ;;  %s692_s9 = smov 2  }
  0x82   : > { %458 = dma.vmem_to_hbm [thread:$0]  (%p965_p12), %s894_s27, 96, %s899_s11, %s293_s20, %s691_s28, %s691_s28, %s692_s9  }
  0x83 PF: > { %s322_s21 = sand.u32 1, %s663_s12   ;;  %p966_p10 = scmp.ne.s32.totalorder %s959_s24, 0 }
  0x84   : > { %p967_p11 = scmp.ge.s32.totalorder %s683_s17, 2  ;;  %s323_s10 = scalar_lea.sflag [#allocation4], %s322_s21 }
  0x86   : > { %p472_p3 = pnand %p967_p11, %p966_p10 }
  0x88   : > { %658 = dma.done.wait (!%p472_p3), %s323_s10, 96  }
  0x89   : > { %660 = vsyncadd (!%p472_p3), %s323_s10, 4294967200  ;;  %s21_s17 = sadd.s32 1, %s683_s17   ;;  %s968_s12 = smov %s667_s13 }
  0x8a   : > { %p18_p7 = scmp.ge.s32.totalorder %s21_s17, 4   ;;  %s969_s13 = smov %s671_s14 }
  0x8b   : > { %s970_s14 = smov %s829_s26  ;;  %s971_s15 = smov %s679_s16 }
  0x8c   : > { %s972_s16 = smov %s974_s5  ;;  %20 = sbr.rel (!%p18_p7) target bundleno = 8 (0x8), region = 87 }
  0x93   :  { %328 = vsyncpa [#allocation3], 1 }
  0x94   :  { %330 = vsyncpa [#allocation3 + $0x1], 1 }
  0x95   :  { %331 = vsyncpa [#allocation4], 1 }
  0x96   :  { %333 = vsyncpa [#allocation4 + $0x1], 1 }
  0x97   :  { %334 = vsyncpa [#allocation5], 1 }
  0x98   :  { %336 = vsyncpa [#allocation5 + $0x1], 1 }
  0x99   :  { %337 = vsyncpa [#allocation6], 1 }
  0x9a   :  { %339 = vsyncpa [#allocation6 + $0x1], 1 }

</bundles_post_ra>
